<compile_context>
chip_gen: v7x
topology: tpu7x:2x2x1
jax: 0.10.0
libtpu: 0.0.40
codegen_flags: <defaults>
</compile_context>

<pallas_src>
import functools

import jax
import jax.numpy as jnp
from jax.experimental import pallas as pl
from jax.experimental.pallas import tpu as pltpu

_CORE_SPLITS = 2  # leading "parallel" axis: both TCs on v7x, harmless elsewhere


def _round_up(x, m):
    return ((x + m - 1) // m) * m


def _vmem_caps():
    """(physical VMEM bytes, per-call tile budget) with generation headroom."""
    try:
        cap = int(pltpu.get_tpu_info().vmem_capacity_bytes)
    except Exception:
        cap = 64 * 1024 * 1024
    # ~75% of physical: ~48 MiB on v7x (64 MiB/TC), ~96 MiB on v5e/v6e (128 MiB).
    budget = min(int(0.75 * cap), 112 * 1024 * 1024)
    return cap, budget


def _choose_block_rows(batch, num_classes, itemsize, budget):
    # Per-row footprint ~= 2*K*itemsize (double-buffered input tile)
    #                    + 4*K*4       (f32 upcast / shifted / exp / select temps)
    per_row = num_classes * (2 * itemsize + 16)
    tb = budget // max(1, per_row)
    tb = max(8, min(2048, (tb // 8) * 8))
    tb = min(tb, _round_up(batch, 8))
    return int(tb)


def _ls_ce_kernel(logits_ref, targets_ref, out_ref, *,
                  epsilon, batch, block_rows, blocks_per_core):
    c = pl.program_id(0)          # core split
    i = pl.program_id(1)          # batch-tile index within this split

    # Zero this split's VMEM-resident accumulator block on its first step.
    @pl.when(i == 0)
    def _():
        out_ref[...] = jnp.zeros_like(out_ref)

    x = logits_ref[...].astype(jnp.float32)                          # (TB, K)
    tb, k = x.shape

    # Numerically-stable per-row log-softmax statistics.
    m = jnp.max(x, axis=1, keepdims=True)                            # (TB, 1)
    shifted = x - m                                                  # (TB, K)
    lse = jnp.log(jnp.sum(jnp.exp(shifted), axis=1, keepdims=True))  # (TB, 1)

    # Fused label-smoothing weights: w = (1-eps)*onehot + eps/K, sum_k w = 1:
    #   row_loss = -sum_k w_k * log_probs_k = lse - sum_k w_k * shifted_k
    col = jax.lax.broadcasted_iota(jnp.int32, (1, k), 1)             # (1, K)
    tgt = targets_ref[...]                                           # (TB, 1) i32
    w = jnp.where(col == tgt,
                  jnp.float32((1.0 - epsilon) + epsilon / k),
                  jnp.float32(epsilon / k))                          # (TB, K)
    row_loss = lse - jnp.sum(w * shifted, axis=1, keepdims=True)     # (TB, 1)

    # Discard rows of the ragged last block / duplicated clamped blocks.
    # Keep this a select (not a multiply): NaN/Inf in garbage rows must not leak.
    block_idx = c * blocks_per_core + i
    row_id = block_idx * block_rows + jax.lax.broadcasted_iota(jnp.int32, (tb, 1), 0)
    row_loss = jnp.where(row_id < batch, row_loss, 0.0)

    out_ref[...] = out_ref[...] + jnp.sum(row_loss)


def cross_entropy_label_smooth(inputs, targets, epsilon=0.1, block_rows=None):
    """inputs: (B, K) float logits (f32/bf16); targets: (B,) int class ids -> scalar f32."""
    B, K = inputs.shape
    itemsize = jnp.dtype(inputs.dtype).itemsize
    cap, budget = _vmem_caps()

    tb = int(block_rows) if block_rows is not None else _choose_block_rows(B, K, itemsize, budget)
    tb = max(8, _round_up(tb, 8))

    num_blocks = pl.cdiv(B, tb)                 # no wrapper-side padding of logits
    bpc = pl.cdiv(num_blocks, _CORE_SPLITS)     # batch tiles per core split

    targets_col = targets.astype(jnp.int32).reshape(B, 1)

    def in_map(c, i):
        # Clamp so duplicated tail blocks on the short split never DMA out of
        # bounds; their rows are discarded in-kernel by the row_id < B select.
        return (jnp.minimum(c * bpc + i, num_blocks - 1), 0)

    kernel = functools.partial(
        _ls_ce_kernel,
        epsilon=float(epsilon),
        batch=int(B),
        block_rows=int(tb),
        blocks_per_core=int(bpc),
    )

    # VMEM accounting: double-buffered input tile + f32 temporaries + slack.
    tile_in = tb * K * itemsize
    footprint = 2 * tile_in + 4 * tb * K * 4 + 4 * tb * 4 + 4 * 8 * 128 * 4 + (4 << 20)
    vmem_limit = int(min(max(budget, footprint), int(0.9 * cap)))

    out = pl.pallas_call(
        kernel,
        out_shape=jax.ShapeDtypeStruct((_CORE_SPLITS, 8, 128), jnp.float32),
        grid=(_CORE_SPLITS, bpc),
        in_specs=[
            pl.BlockSpec((tb, K), in_map),      # logits tile (pipelined HBM->VMEM DMA)
            pl.BlockSpec((tb, 1), in_map),      # targets column tile
        ],
        # One (8,128)-aligned accumulator block per core split; stays VMEM
        # resident across the inner (reduction) axis.
        out_specs=pl.BlockSpec((1, 8, 128), lambda c, i: (c, 0, 0)),
        compiler_params=pltpu.CompilerParams(
            dimension_semantics=("parallel", "arbitrary"),
            vmem_limit_bytes=vmem_limit,
        ),
    )(inputs, targets_col)

    # Cross-core partial add + the mean(0) divide (compile-time 1/B) in the wrapper.
    return jnp.sum(out[:, 0, 0]) * jnp.float32(1.0 / B)


def _reference(inputs, targets, epsilon=0.1):
    """Pure-JAX reference matching the PyTorch module."""
    B, K = inputs.shape
    log_probs = jax.nn.log_softmax(inputs.astype(jnp.float32), axis=1)
    onehot = jax.nn.one_hot(targets, K, dtype=jnp.float32)
    smoothed = (1.0 - epsilon) * onehot + epsilon / K
    return (-smoothed * log_probs).mean(0).sum()


if __name__ == "__main__":
    key = jax.random.PRNGKey(0)
    k1, k2, k3, k4, k5, k6 = jax.random.split(key, 6)

    # Case 1: small single-block shape.
    batch, num_classes = 8, 16
    logits = jax.random.normal(k1, (batch, num_classes), dtype=jnp.float32)
    targets = jax.random.randint(k2, (batch,), 0, num_classes, dtype=jnp.int32)
    loss = jax.block_until_ready(cross_entropy_label_smooth(logits, targets, epsilon=0.1))
    ref = _reference(logits, targets, epsilon=0.1)
    assert jnp.allclose(loss, ref, atol=1e-5, rtol=1e-5), (loss, ref)

    # Case 2: ragged batch with multiple tiles (exercises unpadded last block,
    # the row mask, and the odd-tile-count megacore split with clamped blocks).
    batch2, num_classes2 = 20, 32
    logits2 = jax.random.normal(k3, (batch2, num_classes2), dtype=jnp.float32)
    targets2 = jax.random.randint(k4, (batch2,), 0, num_classes2, dtype=jnp.int32)
    loss2 = jax.block_until_ready(
        cross_entropy_label_smooth(logits2, targets2, epsilon=0.1, block_rows=8))
    ref2 = _reference(logits2, targets2, epsilon=0.1)
    assert jnp.allclose(loss2, ref2, atol=1e-5, rtol=1e-5), (loss2, ref2)

    # Case 3: bf16 logits (exercises dtype-aware tile sizing + in-kernel upcast).
    batch3, num_classes3 = 24, 48
    logits3 = jax.random.normal(k5, (batch3, num_classes3), dtype=jnp.bfloat16)
    targets3 = jax.random.randint(k6, (batch3,), 0, num_classes3, dtype=jnp.int32)
    loss3 = jax.block_until_ready(cross_entropy_label_smooth(logits3, targets3, epsilon=0.1))
    ref3 = _reference(logits3, targets3, epsilon=0.1)
    assert jnp.allclose(loss3, ref3, atol=1e-4, rtol=1e-4), (loss3, ref3)

    print("KERNEL_OK")
</pallas_src>

<mosaic_0001>
module attributes {stable_mosaic.version = 11 : i64} {
  func.func @_ls_ce_kernel(%arg0: i32, %arg1: i32, %arg2: memref<8x16xf32, #tpu.memory_space<vmem>>, %arg3: memref<8x1xi32, #tpu.memory_space<vmem>>, %arg4: memref<1x8x128xf32, #tpu.memory_space<vmem>>) attributes {dimension_semantics = [#tpu.dimension_semantics<parallel>, #tpu.dimension_semantics<arbitrary>], iteration_bounds = array<i64: 2, 1>, scalar_prefetch = 0 : i64, scratch_operands = 0 : i64, tpu.core_type = #tpu.core_type<tc>, window_params = [{transform_indices = @transform_0, window_bounds = array<i64: 8, 16>}, {transform_indices = @transform_1, window_bounds = array<i64: 8, 1>}, {transform_indices = @transform_2, window_bounds = array<i64: 1, 8, 128>}]} {
    %c0_i32 = arith.constant 0 : i32
    %0 = arith.cmpi eq, %arg1, %c0_i32 : i32
    %1 = arith.extui %0 : i1 to i32
    %c0_i32_0 = arith.constant 0 : i32
    %2 = arith.cmpi ne, %1, %c0_i32_0 : i32
    scf.if %2 {
      %cst_17 = arith.constant 0.000000e+00 : f32
      %42 = vector.broadcast %cst_17 : f32 to vector<1x8x128xf32>
      %c0_18 = arith.constant 0 : index
      %c0_19 = arith.constant 0 : index
      %c0_20 = arith.constant 0 : index
      %43 = vector.load %arg4[%c0_18, %c0_19, %c0_20] : memref<1x8x128xf32, #tpu.memory_space<vmem>>, vector<1x8x128xf32>
      tpu.vector_store %arg4[%c0_18, %c0_19, %c0_20], %42 {strides = array<i32>} : memref<1x8x128xf32, #tpu.memory_space<vmem>>, vector<1x8x128xf32>,
    } else {
    }
    %c0 = arith.constant 0 : index
    %c0_1 = arith.constant 0 : index
    %3 = vector.load %arg2[%c0, %c0_1] : memref<8x16xf32, #tpu.memory_space<vmem>>, vector<8x16xf32>
    %cst = arith.constant dense<0xFF800000> : vector<8xf32>
    %4 = vector.multi_reduction <maximumf>, %3, %cst [1] : vector<8x16xf32> to vector<8xf32>
    %5 = vector.shape_cast %4 : vector<8xf32> to vector<8x1xf32>
    %6 = vector.broadcast %5 : vector<8x1xf32> to vector<8x16xf32>
    %7 = arith.subf %3, %6 : vector<8x16xf32>
    %8 = math.exp %7 : vector<8x16xf32>
    %cst_2 = arith.constant dense<0.000000e+00> : vector<8xf32>
    %9 = vector.multi_reduction <add>, %8, %cst_2 [1] : vector<8x16xf32> to vector<8xf32>
    %10 = vector.shape_cast %9 : vector<8xf32> to vector<8x1xf32>
    %11 = math.log %10 : vector<8x1xf32>
    %12 = tpu.iota {dimensions = array<i32: 1>} : vector<1x16xi32>
    %c0_3 = arith.constant 0 : index
    %c0_4 = arith.constant 0 : index
    %13 = vector.load %arg3[%c0_3, %c0_4] : memref<8x1xi32, #tpu.memory_space<vmem>>, vector<8x1xi32>
    %14 = vector.broadcast %12 : vector<1x16xi32> to vector<8x16xi32>
    %15 = vector.broadcast %13 : vector<8x1xi32> to vector<8x16xi32>
    %16 = arith.cmpi eq, %14, %15 : vector<8x16xi32>
    %cst_5 = arith.constant 9.062500e-01 : f32
    %cst_6 = arith.constant 6.250000e-03 : f32
    %17 = vector.broadcast %cst_5 : f32 to vector<8x16xf32>
    %18 = vector.broadcast %cst_6 : f32 to vector<8x16xf32>
    %19 = arith.select %16, %17, %18 : vector<8x16xi1>, vector<8x16xf32>
    %20 = arith.mulf %19, %7 : vector<8x16xf32>
    %cst_7 = arith.constant dense<0.000000e+00> : vector<8xf32>
    %21 = vector.multi_reduction <add>, %20, %cst_7 [1] : vector<8x16xf32> to vector<8xf32>
    %22 = vector.shape_cast %21 : vector<8xf32> to vector<8x1xf32>
    %23 = arith.subf %11, %22 : vector<8x1xf32>
    %c1_i32 = arith.constant 1 : i32
    %24 = arith.muli %arg0, %c1_i32 : i32
    %25 = arith.addi %24, %arg1 : i32
    %c8_i32 = arith.constant 8 : i32
    %26 = arith.muli %25, %c8_i32 : i32
    %27 = tpu.iota {dimensions = array<i32: 0>} : vector<8x1xi32>
    %28 = vector.broadcast %26 : i32 to vector<8x1xi32>
    %29 = arith.addi %28, %27 : vector<8x1xi32>
    %c8_i32_8 = arith.constant 8 : i32
    %30 = vector.broadcast %c8_i32_8 : i32 to vector<8x1xi32>
    %31 = arith.cmpi slt, %29, %30 : vector<8x1xi32>
    %cst_9 = arith.constant 0.000000e+00 : f32
    %32 = vector.broadcast %cst_9 : f32 to vector<8x1xf32>
    %33 = arith.select %31, %23, %32 : vector<8x1xi1>, vector<8x1xf32>
    %c0_10 = arith.constant 0 : index
    %c0_11 = arith.constant 0 : index
    %c0_12 = arith.constant 0 : index
    %34 = vector.load %arg4[%c0_10, %c0_11, %c0_12] : memref<1x8x128xf32, #tpu.memory_space<vmem>>, vector<1x8x128xf32>
    %35 = vector.shape_cast %33 : vector<8x1xf32> to vector<1x8x1xf32>
    %cst_13 = arith.constant dense<0.000000e+00> : vector<1xf32>
    %36 = vector.multi_reduction <add>, %35, %cst_13 [1, 2] : vector<1x8x1xf32> to vector<1xf32>
    %37 = vector.shape_cast %36 : vector<1xf32> to vector<1x1x1xf32>
    %38 = vector.extract %37[0, 0, 0] : f32 from vector<1x1x1xf32>
    %39 = vector.broadcast %38 : f32 to vector<1x8x128xf32>
    %40 = arith.addf %34, %39 : vector<1x8x128xf32>
    %c0_14 = arith.constant 0 : index
    %c0_15 = arith.constant 0 : index
    %c0_16 = arith.constant 0 : index
    %41 = vector.load %arg4[%c0_14, %c0_15, %c0_16] : memref<1x8x128xf32, #tpu.memory_space<vmem>>, vector<1x8x128xf32>
    tpu.vector_store %arg4[%c0_14, %c0_15, %c0_16], %40 {strides = array<i32>} : memref<1x8x128xf32, #tpu.memory_space<vmem>>, vector<1x8x128xf32>,
    return
  }
  func.func @transform_0(%arg0: i32, %arg1: i32) -> (i32, i32) {
    %c1_i32 = arith.constant 1 : i32
    %0 = arith.muli %arg0, %c1_i32 : i32
    %1 = arith.addi %0, %arg1 : i32
    %c0_i32 = arith.constant 0 : i32
    %2 = arith.minsi %1, %c0_i32 : i32
    %c0_i32_0 = arith.constant 0 : i32
    %c0_i32_1 = arith.constant 0 : i32
    return %2, %c0_i32_0 : i32, i32
  }
  func.func @transform_1(%arg0: i32, %arg1: i32) -> (i32, i32) {
    %c1_i32 = arith.constant 1 : i32
    %0 = arith.muli %arg0, %c1_i32 : i32
    %1 = arith.addi %0, %arg1 : i32
    %c0_i32 = arith.constant 0 : i32
    %2 = arith.minsi %1, %c0_i32 : i32
    %c0_i32_0 = arith.constant 0 : i32
    %c0_i32_1 = arith.constant 0 : i32
    return %2, %c0_i32_0 : i32, i32
  }
  func.func @transform_2(%arg0: i32, %arg1: i32) -> (i32, i32, i32) {
    %c0_i32 = arith.constant 0 : i32
    %c0_i32_0 = arith.constant 0 : i32
    %c0_i32_1 = arith.constant 0 : i32
    return %arg0, %c0_i32, %c0_i32_0 : i32, i32, i32
  }
}

</mosaic_0001>

<bundles_post_ra>
// kernel: tpu_custom_call.1
= control target key start
LH: loop header
LB: loop body
LE: loop exit
PB: predicated region body
PF: predicated region fallthrough
CT: control target
= control target key end

     0   :  { %7 = vsyncpa [#allocation3], 0  ;;  %s658_s0 = inlined_call_operand.vmem [shape: f32[8,16], index: 0, kind: input, shape index: {}]   ;;  %s659_s1 = inlined_call_operand.vmem [shape: s32[8,1], index: 1, kind: input, shape index: {}]   ;;  %s660_s2 = inlined_call_operand.hbm [shape: f32[2,8,128], index: 2, kind: output, shape index: {}]  }
   0x1   :  { %9 = vsyncpa [#allocation3 + $0x1], 0  ;;  %s539_s9 = smov 0   ;;  %s541_s10 = smov 0  }
   0x2   :  { %s543_s11 = smov 0   ;;  %s545_s12 = smov 0  }
   0x3   :  { %s547_s13 = smov 0   ;;  %s549_s14 = smov 0  }
   0x4 LB: > { %s357_s15 = sadd.s32 4294967295, %s519_s14   ;;  %s358_s16 = sadd.s32 4294967294, %s519_s14   ;;  %s519_s14 = sphi %s549_s14, %s15_s14   ;;  %s515_s13 = sphi %s547_s13, %s667_s13   ;;  %s511_s12 = sphi %s545_s12, %s666_s12   ;;  %s507_s11 = sphi %s543_s11, %s665_s11   ;;  %s503_s10 = sphi %s541_s10, %s664_s10   ;;  %s499_s9 = sphi %s539_s9, %s663_s9  }
   0x5   : > { %s27_s17 = sadd.s32 1, %s515_s13  ;;  %s98_s18 = sadd.s32 1, %s507_s11 }
   0x6   : > { %p29_p0 = scmp.ge.s32.totalorder %s27_s17, 2  ;;  %p108_p1 = scmp.ne.s32.totalorder %s507_s11, %s503_s10 }
   0x7   : > { %p109_p2 = scmp.eq.s32.totalorder %s357_s15, 1  ;;  %p114_p3 = scmp.ne.s32.totalorder %s503_s10, %s499_s9 }
   0x8   : > { %s669_s17 = smov (%p29_p0, %s27_s17), 0  ;;  %p115_p5 = scmp.eq.s32.totalorder %s358_s16, 1 }
   0x9   : > { %p579_p4 = por %p109_p2, %p108_p1  ;;  %s95_s20 = ssub.s32 %s515_s13, %s669_s17 }
   0xa   : > { %p361_p6 = scmp.ge.s32.totalorder %s519_s14, 1  ;;  %p96_p7 = scmp.eq.s32.totalorder %s95_s20, 0 }
   0xb   : > { %p586_p8 = por %p115_p5, %p114_p3  ;;  %p159_p9 = scmp.lt.s32.totalorder %s519_s14, 3 }
   0xc   : > { %s592_s22 = scalar_select %p96_p7, %s507_s11, %s98_s18  }
   0xd   : > { %p160_p10 = pnand %p361_p6, %p159_p9 }
   0xe   : > { %p191_p11 = scmp.lt.s32.totalorder (!%p160_p10), %s511_s12, 0  ;;  %v521_v0 = vmov (!%p160_p10), 0   ;;  %vm216_vm0 = vcmask (!%p160_p10), 130048   ;;  %v228_v6 = vlaneseq (!%p160_p10)  ;;  %v522_v10 = vmov (!%p160_p10), 0.00625   ;;  %s371_s3 = sshll.u32 (!%p160_p10), %s511_s12, 3 }
   0xf   : > { %163 = sbr.rel (%p160_p10) target bundleno = 565 (0x235), region = 28  ;;  %436 = vset.pattern.permute.xlu0 (!%p160_p10), %v521_v0  ;;  %v245_v18 = vstv (!%p160_p10), %s371_s3  ;;  %vm250_vm3 = vcmask (!%p160_p10), 7168   ;;  %s187_s4 = sand.u32 (!%p160_p10), 1, %s503_s10  }
  0x10   : > { %v229_v8 = vand.u32 (!%p160_p10), 127, %v228_v6  ;;  %v244_v17 = vshrl.u32 (!%p160_p10), %v228_v6, 7  ;;  %s362_s5 = sshll.u32 (!%p160_p10), %s187_s4, 3  ;;  %s373_s6 = sshll.u32 (!%p160_p10), %s511_s12, 7 }
  0x11   : > { %s189_s7 = scalar_lea.vmem (!%p160_p10), [#allocation2], %s362_s5  ;;  %s611_s20 = scalar_lea.hbm (!%p160_p10), %s660_s2, %s373_s6 }
  0x12   : > { %v246_v19 = vadd.s32 (!%p160_p10), %v245_v18, %v244_v17  ;;  %s278_s8 = sshll.u32 (!%p160_p10), %s189_s7, 4  ;;  %s613_s8 = int_to_ptr.vmem [resolvable:$true] %s278_s8 }
  0x14   : > { %vm247_vm2 = vcmp.lt.s32.totalorder (!%p160_p10), %v246_v19, 8 }
  0x16   : > { %s192_s23 = scalar_select %p191_p11, %s511_s12, 0 }
  0x17   : > { %s523_s12 = smov [#allocation2]  }
  0x18   : > { %s671_s23 = smov (!%p191_p11, %s192_s23), 0  ;;  %s445_s25 = sshll.u32 %s523_s12, 4  ;;  %s446_s25 = int_to_ptr.vmem [resolvable:$false] %s445_s25 }
  0x19   : > { %s366_s24 = sshll.u32 %s671_s23, 3  ;;  %s265_s23 = scalar_lea.sflag [#allocation3], %s187_s4 }
  0x1a   : > { %s196_s27 = scalar_lea.vmem %s658_s0, %s366_s24  ;;  %s206_s30 = scalar_lea.vmem %s659_s1, %s366_s24 }
  0x1b   : > { %v215_v1 = vld [vmem:[%s196_s27] sm:$0xff]  ;;  %s441_s24 = scalar_lea.vmem %s613_s8, 128  ;;  %s447_s26 = scalar_lea.vmem %s446_s25, 256 }
  0x1c   : > { %v217_v2 = vsel %vm216_vm0, %v215_v1, -inf  ;;  %v230_v3 = vld [vmem:[%s206_s30] sm:$0xff]  ;;  %p442_p12 = scmp.ne.s32.totalorder %s613_s8, %s441_s24  ;;  %p448_p1 = scmp.lt.s32.totalorder %s613_s8, %s446_s25 }
  0x1d   : > { %218 = vmax.xlane.f32.xlu0 %v217_v2  ;;  %p449_p2 = scmp.lt.s32.totalorder %s447_s26, %s441_s24 }
  0x1e   : > { %p443_p13 = pnand %p442_p12, %p579_p4 }
  0x1f   : > { %p450_p3 = por %p449_p2, %p448_p1 }
  0x20   : > { %p444_p0 = pneg %p443_p13 }
  0x22   : > { %p451_p5 = pnand %p450_p3, %p444_p0 }
  0x33   : > { %232 = vperm.xlu0 %436, %v230_v3  }
  0xaa   : > { %v219_v4 = vpop.xlane.xlu0 %218 }
  0xab   : > { %v220_v5 = vsub.f32 %v215_v1, %v219_v4 }
  0xad   : > { %v221_v7 = vmul.f32 1.442695, %v220_v5 }
  0xaf   : > { %437 = vpow2.f32 %v221_v7 }
  0xb2   : > { %v233_v9 = vpop.permute.xlu0 %232 }
  0xb3   : > { %vm234_vm1 = vcmp.eq.s32.totalorder %v229_v8, %v233_v9 }
  0xb4   : > { %v235_v11 = vsel %vm234_vm1, 0.90625, %v522_v10 }
  0xb5   : > { %v236_v14 = vmul.f32 %v235_v11, %v220_v5 }
  0xb7   : > { %v237_v15 = vsel %vm216_vm0, %v236_v14, 0.0 }
  0xb9   : > { %v438_v12 = vpop.eup %437 }
  0xba   : > { %v223_v13 = vsel %vm216_vm0, %v438_v12, 0.0 }
  0xbb   : > { %224 = vadd.xlane.f32.xlu1 %v223_v13 }
  0xbf   : > { %238 = vadd.xlane.f32.xlu1 %v237_v15 }
 0x148   : > { %v225_v16 = vpop.xlane.xlu1 %224 }
 0x149   : > { %439 = vlog2.f32 %v225_v16 }
 0x14c   : > { %v239_v22 = vpop.xlane.xlu1 %238 }
 0x153   : > { %v440_v20 = vpop.eup %439 }
 0x154   : > { %v227_v21 = vmul.f32 0.6931472, %v440_v20 }
 0x156   : > { %v240_v23 = vsub.f32 %v227_v21, %v239_v22 }
 0x158   : > { %v248_v24 = vsel %vm247_vm2, %v240_v23, 0.0 }
 0x159   : > { %v251_v25 = vsel %vm250_vm3, %v248_v24, 0.0 }
 0x15a   : > { %252 = vadd.xlane.f32.xlu1 %v251_v25 }
 0x1e7   : > { %v253_v26 = vpop.xlane.xlu1 %252 }
 0x1e8   : > { %v254_v27 = vrot.slane %v253_v26, 4 }
 0x1ea   : > { %v255_v28 = vadd.f32 %v254_v27, %v253_v26 }
 0x1ec   : > { %v256_v29 = vrot.slane %v255_v28, 2 }
 0x1ee   : > { %v257_v30 = vadd.f32 %v256_v29, %v255_v28 }
 0x1f0   : > { %v258_v31 = vrot.slane %v257_v30, 1 }
 0x1f2   : > { %v259_v32 = vadd.f32 %v258_v31, %v257_v30 }
 0x1f4   : > { %376 = vpush %v259_v32 }
 0x225   : > { %s377_s15 = spop %376 }
 0x226   : > { %v261_v33 = vstv %s377_s15 }
 0x227   : > { %263 = vst [vmem:[%s189_s7] sm:$0xff] %v261_v33 }
 0x228   : > { %454 = shalt.err (!%p451_p5)
}
 0x229   : > { %s455_s27 = scalar_lea.hbm %s611_s20, 128  ;;  %s459_s30 = scalar_lea.hbm %s660_s2, 256 }
 0x22a   : > { %p456_p6 = scmp.ne.s32.totalorder %s611_s20, %s455_s27  ;;  %p460_p10 = scmp.lt.u32.totalorder %s611_s20, %s660_s2 }
 0x22b   : > { %p461_p11 = scmp.lt.u32.totalorder %s459_s30, %s455_s27  ;;  %p463_p13 = scmp.lt.u32.totalorder %s455_s27, %s611_s20 }
 0x22c   : > { %p457_p7 = pnand %p456_p6, %p579_p4 }
 0x22d   : > { %p462_p12 = por %p461_p11, %p460_p10 }
 0x22e   : > { %p458_p9 = pneg %p457_p7 }
 0x22f   : > { %p464_p0 = por %p463_p13, %p462_p12 }
 0x231   : > { %p465_p1 = pnand %p464_p0, %p458_p9 }
 0x233   : > { %468 = shalt.err (!%p465_p1)
}
 0x234   : > { %378 = dma.vmem_to_hbm [thread:$0]  (%p579_p4), %s613_s8, 128, %s611_s20, %s265_s23  }
 0x235 PF: > { %p384_p2 = scmp.ge.s32.totalorder %s519_s14, 2  ;;  %s290_s5 = sand.u32 1, %s499_s9  }
 0x236   : > { %s291_s6 = scalar_lea.sflag [#allocation3], %s290_s5 }
 0x237   : > { %p381_p3 = pnand %p384_p2, %p586_p8 }
 0x239   : > { %494 = dma.done.wait (!%p381_p3), %s291_s6, 128  }
 0x23a   : > { %496 = vsyncadd (!%p381_p3), %s291_s6, 4294967168  ;;  %s15_s14 = sadd.s32 1, %s519_s14   ;;  %s663_s9 = smov %s503_s10 }
 0x23b   : > { %p12_p5 = scmp.ge.s32.totalorder %s15_s14, 4   ;;  %s664_s10 = smov %s507_s11 }
 0x23c   : > { %s665_s11 = smov %s592_s22  ;;  %s666_s12 = smov %s515_s13 }
 0x23d   : > { %s667_s13 = smov %s669_s17  ;;  %14 = sbr.rel (!%p12_p5) target bundleno = 4 (0x4), region = 70 }
 0x244   :  { %296 = vsyncpa [#allocation3], 1 }
 0x245   :  { %298 = vsyncpa [#allocation3 + $0x1], 1 }

</bundles_post_ra>
